<compile_context>
chip_gen: v6e
topology: v6e:2x2x1
jax: 0.10.0
libtpu: 0.0.40
codegen_flags: <defaults>
</compile_context>

<pallas_src>
from functools import partial

import jax
import jax.numpy as jnp
from jax.experimental import pallas as pl
from jax.experimental.pallas import tpu as pltpu


_N_CAND = 4
_EPS = 1e-8          # matches torch cosine_similarity / CosineEmbeddingLoss eps


def _cdiv(a, b):
    return -(-a // b)


def _vmem_capacity_bytes():
    try:
        cap = getattr(pltpu.get_tpu_info(), "vmem_capacity_bytes", None)
        if cap:
            return int(cap)
    except Exception:
        pass
    return 64 * 1024 * 1024          # v7x per-TensorCore floor; safe everywhere


def _vmem_limit_bytes():
    # Headroom for compiler scratch: <=48 MiB on v7x (64 MiB VMEM),
    # up to 96 MiB on v5e/v6e (128 MiB VMEM).
    return min(_vmem_capacity_bytes() * 3 // 4, 96 * 1024 * 1024)


def _pick_block_b(bs, feat, itemsize):
    """Batch rows per grid step: as large as the VMEM budget allows while
    keeping a multi-step (DMA/compute-overlapped), preferably even-length grid."""
    if bs <= 8:
        return bs                    # tiny batch: one block == full array dims
    block_budget = min(_vmem_limit_bytes() // 2, 32 * 1024 * 1024)
    # Per batch row, per pipelined step: double-buffered att1+att2 blocks, the
    # lane-padded (bt,1)->(bt,128) int32 target blocks and (bt,4)->(bt,128)
    # outputs, plus in-kernel f32 temporaries (candidate slices, gt rows,
    # products) ~ 6*feat*4 bytes.
    per_row = (2 * (2 * feat * itemsize + 4 * 128 * 4)
               + 6 * feat * 4)
    bt_cap = max(8, (block_budget // per_row) // 8 * 8)
    # Keep >=2 grid steps (>=8 for larger batches) so the pipeline overlaps.
    target_steps = 8 if bs >= 64 else 2
    bt_pipe = max(8, (bs // target_steps) // 8 * 8)
    bt = max(8, min(bt_cap, bt_pipe, (bs // 8) * 8))
    # Prefer an even number of steps so both v7x TensorCores stay busy, but
    # never shrink the tile by more than 2x for it.
    if _cdiv(bs, bt) % 2 == 1:
        for cand in range(bt - 8, 7, -8):
            if _cdiv(bs, cand) % 2 == 0:
                if cand * 2 >= bt:
                    bt = cand
                break
    return bt


def _cos_sim_kernel(t1_ref, t2_ref, a1_ref, a2_ref, sim1_ref, sim2_ref):
    """Per batch-tile ground-truth cosine similarities, VPU only.

    t1/t2:     (bt, 1)     int32 targets
    a1/a2:     (bt, 4*D)   lane-flattened attention maps (native dtype)
    sim1/sim2: (bt, 4)     cos(att1[b, i], att2[b, t2[b]]) and the symmetric
    """
    f32 = jnp.float32
    feat = a1_ref.shape[-1]
    d = feat // _N_CAND

    x1 = a1_ref[...]
    x2 = a2_ref[...]
    t1 = t1_ref[...]                                     # (bt, 1) int32
    t2 = t2_ref[...]

    # Per-candidate views of the lane-flattened slab (static lane slices);
    # single f32 cast per element (no-op for f32 inputs).
    p1 = [x1[:, j * d:(j + 1) * d].astype(f32) for j in range(_N_CAND)]
    p2 = [x2[:, j * d:(j + 1) * d].astype(f32) for j in range(_N_CAND)]

    # Ground-truth rows selected with 0/1 weights on the VPU (no gather/MXU).
    bt = x1.shape[0]
    x1_gt = jnp.zeros((bt, d), f32)
    x2_gt = jnp.zeros((bt, d), f32)
    for j in range(_N_CAND):
        x1_gt = x1_gt + p1[j] * (t1 == j).astype(f32)
        x2_gt = x2_gt + p2[j] * (t2 == j).astype(f32)

    eps2 = f32(_EPS * _EPS)
    # Per-norm eps clamp (matches torch: dot / (max(||a||,eps)*max(||b||,eps))).
    inv1_gt = jax.lax.rsqrt(
        jnp.maximum(jnp.sum(x1_gt * x1_gt, -1, keepdims=True), eps2))
    inv2_gt = jax.lax.rsqrt(
        jnp.maximum(jnp.sum(x2_gt * x2_gt, -1, keepdims=True), eps2))

    lane = jax.lax.broadcasted_iota(jnp.int32, sim1_ref.shape, 1)   # (bt, 4)
    sim1 = jnp.zeros(sim1_ref.shape, f32)
    sim2 = jnp.zeros(sim2_ref.shape, f32)
    for j in range(_N_CAND):
        inv1j = jax.lax.rsqrt(
            jnp.maximum(jnp.sum(p1[j] * p1[j], -1, keepdims=True), eps2))
        inv2j = jax.lax.rsqrt(
            jnp.maximum(jnp.sum(p2[j] * p2[j], -1, keepdims=True), eps2))
        c1 = jnp.sum(p1[j] * x2_gt, -1, keepdims=True) * inv1j * inv2_gt
        c2 = jnp.sum(p2[j] * x1_gt, -1, keepdims=True) * inv2j * inv1_gt
        sim1 = sim1 + jnp.where(lane == j, c1, 0.0)
        sim2 = sim2 + jnp.where(lane == j, c2, 0.0)

    sim1_ref[...] = sim1.astype(sim1_ref.dtype)
    sim2_ref[...] = sim2.astype(sim2_ref.dtype)


def _gt_cosine_sims(att1, att2, t1, t2):
    """Pallas launch. att*: (bs, 4*D) native dtype, t*: (bs, 1) int32.
    Returns (sim1, sim2), each (bs, 4) float32."""
    bs, feat = att1.shape
    bt = _pick_block_b(bs, feat, att1.dtype.itemsize)
    grid = (_cdiv(bs, bt),)

    flops = 10 * bs * feat                 # norms + gt build + dots (VPU MACs)
    transcendentals = 10 * bs              # rsqrts per row (2 gt + 8 candidates)
    bytes_accessed = (2 * bs * feat * att1.dtype.itemsize
                      + 2 * bs * 4
                      + 2 * bs * _N_CAND * 4)

    return pl.pallas_call(
        _cos_sim_kernel,
        out_shape=(jax.ShapeDtypeStruct((bs, _N_CAND), jnp.float32),
                   jax.ShapeDtypeStruct((bs, _N_CAND), jnp.float32)),
        grid_spec=pltpu.PrefetchScalarGridSpec(
            num_scalar_prefetch=0,
            grid=grid,
            in_specs=[
                pl.BlockSpec((bt, 1), lambda b: (b, 0)),
                pl.BlockSpec((bt, 1), lambda b: (b, 0)),
                pl.BlockSpec((bt, feat), lambda b: (b, 0)),
                pl.BlockSpec((bt, feat), lambda b: (b, 0)),
            ],
            out_specs=[
                pl.BlockSpec((bt, _N_CAND), lambda b: (b, 0)),
                pl.BlockSpec((bt, _N_CAND), lambda b: (b, 0)),
            ],
        ),
        compiler_params=pltpu.CompilerParams(
            dimension_semantics=("parallel",),
            vmem_limit_bytes=_vmem_limit_bytes()),
        cost_estimate=pl.CostEstimate(
            flops=flops, transcendentals=transcendentals,
            bytes_accessed=bytes_accessed),
    )(t1, t2, att1, att2)


@partial(jax.jit, static_argnames=("margin", "layers"))
def _forward_impl(att1_list, target1, att2_list, target2, *, margin, layers):
    bs = target1.shape[0]
    t1 = target1.astype(jnp.int32).reshape(bs, 1)
    t2 = target2.astype(jnp.int32).reshape(bs, 1)
    cand = jnp.arange(_N_CAND, dtype=jnp.int32)[None, :]
    pos1 = cand == t1                                   # (bs, 4) bool
    pos2 = cand == t2

    loss = jnp.float32(0.0)
    metrics = {}
    for layer in layers:
        att1 = att1_list[layer].reshape(bs, -1)         # (bs, 4*D): free view
        att2 = att2_list[layer].reshape(bs, -1)

        sim1, sim2 = _gt_cosine_sims(att1, att2, t1, t2)

        # CosineEmbeddingLoss(margin): y=+1 -> 1-cos ; y=-1 -> max(0, cos-margin)
        loss1 = jnp.mean(jnp.where(pos1, 1.0 - sim1,
                                   jnp.maximum(sim1 - margin, 0.0)))
        loss2 = jnp.mean(jnp.where(pos2, 1.0 - sim2,
                                   jnp.maximum(sim2 - margin, 0.0)))
        loss = loss + (loss1 + loss2) / 2.0

        acc1 = jnp.mean((jnp.argmax(sim1, -1) == t1[:, 0]).astype(jnp.float32))
        acc2 = jnp.mean((jnp.argmax(sim2, -1) == t2[:, 0]).astype(jnp.float32))

        metrics[f'loss1_{layer}'] = loss1
        metrics[f'loss2_{layer}'] = loss2
        metrics[f'acc1_{layer}'] = acc1
        metrics[f'acc2_{layer}'] = acc2

    loss = loss / len(layers)
    return loss, metrics


def cosine_embedding_align_loss4_forward(att1_list, att1_mask, target1,
                                         att2_list, att2_mask, target2,
                                         *, margin=0.2, layers=(11,)):
    """JAX/Pallas port of CosineEmbeddingAlignLoss4.forward (record=False).

    The metrics dict holds device scalars: convert to Python floats once,
    outside the jitted region, if torch's .item() behaviour is needed
    (per-metric host syncs serialize dispatch and dwarf the kernel time).
    """
    del att1_mask, att2_mask                  # unused by the torch forward too
    return _forward_impl(att1_list, target1, att2_list, target2,
                         margin=float(margin), layers=tuple(layers))


def _reference_forward(att1_list, att1_mask, target1, att2_list, att2_mask,
                       target2, *, margin=0.2, layers=(11,)):
    """Pure-JAX mirror of the PyTorch forward (for correctness checking)."""
    bs = att1_mask.shape[0]
    t1 = target1.astype(jnp.int32)
    t2 = target2.astype(jnp.int32)
    loss = 0.0
    out = {}

    def cos(a, b):  # a: (bs, 4, D), b: (bs, D)
        na = jnp.maximum(jnp.sqrt(jnp.sum(a * a, -1)), _EPS)
        nb = jnp.maximum(jnp.sqrt(jnp.sum(b * b, -1)), _EPS)[:, None]
        return jnp.sum(a * b[:, None, :], -1) / (na * nb)

    for layer in layers:
        att1 = att1_list[layer].reshape(bs, _N_CAND, -1).astype(jnp.float32)
        att2 = att2_list[layer].reshape(bs, _N_CAND, -1).astype(jnp.float32)
        att1_gt = att1[jnp.arange(bs), t1]              # (bs, D)
        att2_gt = att2[jnp.arange(bs), t2]

        sim1 = cos(att1, att2_gt)
        sim2 = cos(att2, att1_gt)
        pos1 = jnp.arange(_N_CAND)[None, :] == t1[:, None]
        pos2 = jnp.arange(_N_CAND)[None, :] == t2[:, None]
        l1 = jnp.mean(jnp.where(pos1, 1.0 - sim1, jnp.maximum(sim1 - margin, 0.0)))
        l2 = jnp.mean(jnp.where(pos2, 1.0 - sim2, jnp.maximum(sim2 - margin, 0.0)))
        loss = loss + (l1 + l2) / 2.0
        out[f'loss1_{layer}'] = float(l1)
        out[f'loss2_{layer}'] = float(l2)
        out[f'acc1_{layer}'] = float(
            jnp.mean((jnp.argmax(sim1, -1) == t1).astype(jnp.float32)))
        out[f'acc2_{layer}'] = float(
            jnp.mean((jnp.argmax(sim2, -1) == t2).astype(jnp.float32)))
    return loss / len(layers), out


if __name__ == "__main__":
    def run_case(case_idx, bs, head, n_obj):
        key = jax.random.fold_in(jax.random.PRNGKey(0), case_idx)
        k1, k2, k3, k4, k5, k6 = jax.random.split(key, 6)
        layers = (11,)
        shape = (bs, _N_CAND, head, n_obj)       # att shape (bs, 4, head, n_obj)

        att1_list = {11: jax.random.normal(k1, shape, dtype=jnp.float32)}
        att2_list = {11: jax.random.normal(k2, shape, dtype=jnp.float32)}
        att1_mask = jax.random.uniform(k3, shape) > 0.3
        att2_mask = jax.random.uniform(k4, shape) > 0.3
        target1 = jax.random.randint(k5, (bs,), 0, _N_CAND)
        target2 = jax.random.randint(k6, (bs,), 0, _N_CAND)

        loss, out_dict = cosine_embedding_align_loss4_forward(
            att1_list, att1_mask, target1, att2_list, att2_mask, target2,
            margin=0.2, layers=layers)
        loss = jax.block_until_ready(loss)

        ref_loss, ref_dict = _reference_forward(
            att1_list, att1_mask, target1, att2_list, att2_mask, target2,
            margin=0.2, layers=layers)

        assert jnp.allclose(loss, ref_loss, rtol=1e-4, atol=1e-4), (loss, ref_loss)
        for k in ref_dict:
            got = float(out_dict[k])              # single host read, at the end
            assert abs(got - ref_dict[k]) < 1e-4, (k, got, ref_dict[k])

    run_case(0, bs=2, head=4, n_obj=8)      # tiny batch: single-block path
    run_case(1, bs=32, head=4, n_obj=32)    # multi-step pipelined path (grid=(2,))
    print("KERNEL_OK")
</pallas_src>

<mosaic_0001>
module attributes {stable_mosaic.version = 11 : i64} {
  func.func @_cos_sim_kernel(%arg0: i32, %arg1: memref<2x1xi32, #tpu.memory_space<vmem>>, %arg2: memref<2x1xi32, #tpu.memory_space<vmem>>, %arg3: memref<2x128xf32, #tpu.memory_space<vmem>>, %arg4: memref<2x128xf32, #tpu.memory_space<vmem>>, %arg5: memref<2x4xf32, #tpu.memory_space<vmem>>, %arg6: memref<2x4xf32, #tpu.memory_space<vmem>>) attributes {dimension_semantics = [#tpu.dimension_semantics<parallel>], iteration_bounds = array<i64: 1>, scalar_prefetch = 0 : i64, scratch_operands = 0 : i64, tpu.core_type = #tpu.core_type<tc>, window_params = [{transform_indices = @transform_0, window_bounds = array<i64: 2, 1>}, {transform_indices = @transform_1, window_bounds = array<i64: 2, 1>}, {transform_indices = @transform_2, window_bounds = array<i64: 2, 128>}, {transform_indices = @transform_3, window_bounds = array<i64: 2, 128>}, {transform_indices = @transform_4, window_bounds = array<i64: 2, 4>}, {transform_indices = @transform_5, window_bounds = array<i64: 2, 4>}]} {
    %c0 = arith.constant 0 : index
    %c0_0 = arith.constant 0 : index
    %0 = vector.load %arg3[%c0, %c0_0] : memref<2x128xf32, #tpu.memory_space<vmem>>, vector<2x128xf32>
    %c0_1 = arith.constant 0 : index
    %c0_2 = arith.constant 0 : index
    %1 = vector.load %arg4[%c0_1, %c0_2] : memref<2x128xf32, #tpu.memory_space<vmem>>, vector<2x128xf32>
    %c0_3 = arith.constant 0 : index
    %c0_4 = arith.constant 0 : index
    %2 = vector.load %arg1[%c0_3, %c0_4] : memref<2x1xi32, #tpu.memory_space<vmem>>, vector<2x1xi32>
    %c0_5 = arith.constant 0 : index
    %c0_6 = arith.constant 0 : index
    %3 = vector.load %arg2[%c0_5, %c0_6] : memref<2x1xi32, #tpu.memory_space<vmem>>, vector<2x1xi32>
    %4 = vector.extract_strided_slice %0 {offsets = [0, 0], sizes = [2, 32], strides = [1, 1]} : vector<2x128xf32> to vector<2x32xf32>
    %5 = vector.extract_strided_slice %0 {offsets = [0, 32], sizes = [2, 32], strides = [1, 1]} : vector<2x128xf32> to vector<2x32xf32>
    %6 = vector.extract_strided_slice %0 {offsets = [0, 64], sizes = [2, 32], strides = [1, 1]} : vector<2x128xf32> to vector<2x32xf32>
    %7 = vector.extract_strided_slice %0 {offsets = [0, 96], sizes = [2, 32], strides = [1, 1]} : vector<2x128xf32> to vector<2x32xf32>
    %8 = vector.extract_strided_slice %1 {offsets = [0, 0], sizes = [2, 32], strides = [1, 1]} : vector<2x128xf32> to vector<2x32xf32>
    %9 = vector.extract_strided_slice %1 {offsets = [0, 32], sizes = [2, 32], strides = [1, 1]} : vector<2x128xf32> to vector<2x32xf32>
    %10 = vector.extract_strided_slice %1 {offsets = [0, 64], sizes = [2, 32], strides = [1, 1]} : vector<2x128xf32> to vector<2x32xf32>
    %11 = vector.extract_strided_slice %1 {offsets = [0, 96], sizes = [2, 32], strides = [1, 1]} : vector<2x128xf32> to vector<2x32xf32>
    %cst = arith.constant 0.000000e+00 : f32
    %12 = vector.broadcast %cst : f32 to vector<2x32xf32>
    %cst_7 = arith.constant 0.000000e+00 : f32
    %13 = vector.broadcast %cst_7 : f32 to vector<2x32xf32>
    %c0_i32 = arith.constant 0 : i32
    %14 = vector.broadcast %c0_i32 : i32 to vector<2x1xi32>
    %15 = arith.cmpi eq, %2, %14 : vector<2x1xi32>
    %16 = arith.extui %15 : vector<2x1xi1> to vector<2x1xi32>
    %17 = arith.sitofp %16 : vector<2x1xi32> to vector<2x1xf32>
    %18 = vector.broadcast %17 : vector<2x1xf32> to vector<2x32xf32>
    %19 = arith.mulf %4, %18 : vector<2x32xf32>
    %20 = arith.addf %12, %19 : vector<2x32xf32>
    %c0_i32_8 = arith.constant 0 : i32
    %21 = vector.broadcast %c0_i32_8 : i32 to vector<2x1xi32>
    %22 = arith.cmpi eq, %3, %21 : vector<2x1xi32>
    %23 = arith.extui %22 : vector<2x1xi1> to vector<2x1xi32>
    %24 = arith.sitofp %23 : vector<2x1xi32> to vector<2x1xf32>
    %25 = vector.broadcast %24 : vector<2x1xf32> to vector<2x32xf32>
    %26 = arith.mulf %8, %25 : vector<2x32xf32>
    %27 = arith.addf %13, %26 : vector<2x32xf32>
    %c1_i32 = arith.constant 1 : i32
    %28 = vector.broadcast %c1_i32 : i32 to vector<2x1xi32>
    %29 = arith.cmpi eq, %2, %28 : vector<2x1xi32>
    %30 = arith.extui %29 : vector<2x1xi1> to vector<2x1xi32>
    %31 = arith.sitofp %30 : vector<2x1xi32> to vector<2x1xf32>
    %32 = vector.broadcast %31 : vector<2x1xf32> to vector<2x32xf32>
    %33 = arith.mulf %5, %32 : vector<2x32xf32>
    %34 = arith.addf %20, %33 : vector<2x32xf32>
    %c1_i32_9 = arith.constant 1 : i32
    %35 = vector.broadcast %c1_i32_9 : i32 to vector<2x1xi32>
    %36 = arith.cmpi eq, %3, %35 : vector<2x1xi32>
    %37 = arith.extui %36 : vector<2x1xi1> to vector<2x1xi32>
    %38 = arith.sitofp %37 : vector<2x1xi32> to vector<2x1xf32>
    %39 = vector.broadcast %38 : vector<2x1xf32> to vector<2x32xf32>
    %40 = arith.mulf %9, %39 : vector<2x32xf32>
    %41 = arith.addf %27, %40 : vector<2x32xf32>
    %c2_i32 = arith.constant 2 : i32
    %42 = vector.broadcast %c2_i32 : i32 to vector<2x1xi32>
    %43 = arith.cmpi eq, %2, %42 : vector<2x1xi32>
    %44 = arith.extui %43 : vector<2x1xi1> to vector<2x1xi32>
    %45 = arith.sitofp %44 : vector<2x1xi32> to vector<2x1xf32>
    %46 = vector.broadcast %45 : vector<2x1xf32> to vector<2x32xf32>
    %47 = arith.mulf %6, %46 : vector<2x32xf32>
    %48 = arith.addf %34, %47 : vector<2x32xf32>
    %c2_i32_10 = arith.constant 2 : i32
    %49 = vector.broadcast %c2_i32_10 : i32 to vector<2x1xi32>
    %50 = arith.cmpi eq, %3, %49 : vector<2x1xi32>
    %51 = arith.extui %50 : vector<2x1xi1> to vector<2x1xi32>
    %52 = arith.sitofp %51 : vector<2x1xi32> to vector<2x1xf32>
    %53 = vector.broadcast %52 : vector<2x1xf32> to vector<2x32xf32>
    %54 = arith.mulf %10, %53 : vector<2x32xf32>
    %55 = arith.addf %41, %54 : vector<2x32xf32>
    %c3_i32 = arith.constant 3 : i32
    %56 = vector.broadcast %c3_i32 : i32 to vector<2x1xi32>
    %57 = arith.cmpi eq, %2, %56 : vector<2x1xi32>
    %58 = arith.extui %57 : vector<2x1xi1> to vector<2x1xi32>
    %59 = arith.sitofp %58 : vector<2x1xi32> to vector<2x1xf32>
    %60 = vector.broadcast %59 : vector<2x1xf32> to vector<2x32xf32>
    %61 = arith.mulf %7, %60 : vector<2x32xf32>
    %62 = arith.addf %48, %61 : vector<2x32xf32>
    %c3_i32_11 = arith.constant 3 : i32
    %63 = vector.broadcast %c3_i32_11 : i32 to vector<2x1xi32>
    %64 = arith.cmpi eq, %3, %63 : vector<2x1xi32>
    %65 = arith.extui %64 : vector<2x1xi1> to vector<2x1xi32>
    %66 = arith.sitofp %65 : vector<2x1xi32> to vector<2x1xf32>
    %67 = vector.broadcast %66 : vector<2x1xf32> to vector<2x32xf32>
    %68 = arith.mulf %11, %67 : vector<2x32xf32>
    %69 = arith.addf %55, %68 : vector<2x32xf32>
    %70 = arith.mulf %62, %62 : vector<2x32xf32>
    %cst_12 = arith.constant dense<0.000000e+00> : vector<2xf32>
    %71 = vector.multi_reduction <add>, %70, %cst_12 [1] : vector<2x32xf32> to vector<2xf32>
    %72 = vector.shape_cast %71 : vector<2xf32> to vector<2x1xf32>
    %cst_13 = arith.constant 1.000000e-16 : f32
    %73 = vector.broadcast %cst_13 : f32 to vector<2x1xf32>
    %74 = arith.maximumf %72, %73 : vector<2x1xf32>
    %75 = math.rsqrt %74 : vector<2x1xf32>
    %76 = arith.mulf %69, %69 : vector<2x32xf32>
    %cst_14 = arith.constant dense<0.000000e+00> : vector<2xf32>
    %77 = vector.multi_reduction <add>, %76, %cst_14 [1] : vector<2x32xf32> to vector<2xf32>
    %78 = vector.shape_cast %77 : vector<2xf32> to vector<2x1xf32>
    %cst_15 = arith.constant 1.000000e-16 : f32
    %79 = vector.broadcast %cst_15 : f32 to vector<2x1xf32>
    %80 = arith.maximumf %78, %79 : vector<2x1xf32>
    %81 = math.rsqrt %80 : vector<2x1xf32>
    %82 = tpu.iota {dimensions = array<i32: 1>} : vector<2x4xi32>
    %cst_16 = arith.constant 0.000000e+00 : f32
    %83 = vector.broadcast %cst_16 : f32 to vector<2x4xf32>
    %cst_17 = arith.constant 0.000000e+00 : f32
    %84 = vector.broadcast %cst_17 : f32 to vector<2x4xf32>
    %85 = arith.mulf %4, %4 : vector<2x32xf32>
    %cst_18 = arith.constant dense<0.000000e+00> : vector<2xf32>
    %86 = vector.multi_reduction <add>, %85, %cst_18 [1] : vector<2x32xf32> to vector<2xf32>
    %87 = vector.shape_cast %86 : vector<2xf32> to vector<2x1xf32>
    %cst_19 = arith.constant 1.000000e-16 : f32
    %88 = vector.broadcast %cst_19 : f32 to vector<2x1xf32>
    %89 = arith.maximumf %87, %88 : vector<2x1xf32>
    %90 = math.rsqrt %89 : vector<2x1xf32>
    %91 = arith.mulf %8, %8 : vector<2x32xf32>
    %cst_20 = arith.constant dense<0.000000e+00> : vector<2xf32>
    %92 = vector.multi_reduction <add>, %91, %cst_20 [1] : vector<2x32xf32> to vector<2xf32>
    %93 = vector.shape_cast %92 : vector<2xf32> to vector<2x1xf32>
    %cst_21 = arith.constant 1.000000e-16 : f32
    %94 = vector.broadcast %cst_21 : f32 to vector<2x1xf32>
    %95 = arith.maximumf %93, %94 : vector<2x1xf32>
    %96 = math.rsqrt %95 : vector<2x1xf32>
    %97 = arith.mulf %4, %69 : vector<2x32xf32>
    %cst_22 = arith.constant dense<0.000000e+00> : vector<2xf32>
    %98 = vector.multi_reduction <add>, %97, %cst_22 [1] : vector<2x32xf32> to vector<2xf32>
    %99 = vector.shape_cast %98 : vector<2xf32> to vector<2x1xf32>
    %100 = arith.mulf %99, %90 : vector<2x1xf32>
    %101 = arith.mulf %100, %81 : vector<2x1xf32>
    %102 = arith.mulf %8, %62 : vector<2x32xf32>
    %cst_23 = arith.constant dense<0.000000e+00> : vector<2xf32>
    %103 = vector.multi_reduction <add>, %102, %cst_23 [1] : vector<2x32xf32> to vector<2xf32>
    %104 = vector.shape_cast %103 : vector<2xf32> to vector<2x1xf32>
    %105 = arith.mulf %104, %96 : vector<2x1xf32>
    %106 = arith.mulf %105, %75 : vector<2x1xf32>
    %c0_i32_24 = arith.constant 0 : i32
    %107 = vector.broadcast %c0_i32_24 : i32 to vector<2x4xi32>
    %108 = arith.cmpi eq, %82, %107 : vector<2x4xi32>
    %cst_25 = arith.constant 0.000000e+00 : f32
    %109 = vector.shape_cast %101 : vector<2x1xf32> to vector<2x1xf32>
    %110 = vector.broadcast %109 : vector<2x1xf32> to vector<2x4xf32>
    %111 = vector.broadcast %cst_25 : f32 to vector<2x4xf32>
    %112 = arith.select %108, %110, %111 : vector<2x4xi1>, vector<2x4xf32>
    %113 = arith.addf %83, %112 : vector<2x4xf32>
    %c0_i32_26 = arith.constant 0 : i32
    %114 = vector.broadcast %c0_i32_26 : i32 to vector<2x4xi32>
    %115 = arith.cmpi eq, %82, %114 : vector<2x4xi32>
    %cst_27 = arith.constant 0.000000e+00 : f32
    %116 = vector.shape_cast %106 : vector<2x1xf32> to vector<2x1xf32>
    %117 = vector.broadcast %116 : vector<2x1xf32> to vector<2x4xf32>
    %118 = vector.broadcast %cst_27 : f32 to vector<2x4xf32>
    %119 = arith.select %115, %117, %118 : vector<2x4xi1>, vector<2x4xf32>
    %120 = arith.addf %84, %119 : vector<2x4xf32>
    %121 = arith.mulf %5, %5 : vector<2x32xf32>
    %cst_28 = arith.constant dense<0.000000e+00> : vector<2xf32>
    %122 = vector.multi_reduction <add>, %121, %cst_28 [1] : vector<2x32xf32> to vector<2xf32>
    %123 = vector.shape_cast %122 : vector<2xf32> to vector<2x1xf32>
    %cst_29 = arith.constant 1.000000e-16 : f32
    %124 = vector.broadcast %cst_29 : f32 to vector<2x1xf32>
    %125 = arith.maximumf %123, %124 : vector<2x1xf32>
    %126 = math.rsqrt %125 : vector<2x1xf32>
    %127 = arith.mulf %9, %9 : vector<2x32xf32>
    %cst_30 = arith.constant dense<0.000000e+00> : vector<2xf32>
    %128 = vector.multi_reduction <add>, %127, %cst_30 [1] : vector<2x32xf32> to vector<2xf32>
    %129 = vector.shape_cast %128 : vector<2xf32> to vector<2x1xf32>
    %cst_31 = arith.constant 1.000000e-16 : f32
    %130 = vector.broadcast %cst_31 : f32 to vector<2x1xf32>
    %131 = arith.maximumf %129, %130 : vector<2x1xf32>
    %132 = math.rsqrt %131 : vector<2x1xf32>
    %133 = arith.mulf %5, %69 : vector<2x32xf32>
    %cst_32 = arith.constant dense<0.000000e+00> : vector<2xf32>
    %134 = vector.multi_reduction <add>, %133, %cst_32 [1] : vector<2x32xf32> to vector<2xf32>
    %135 = vector.shape_cast %134 : vector<2xf32> to vector<2x1xf32>
    %136 = arith.mulf %135, %126 : vector<2x1xf32>
    %137 = arith.mulf %136, %81 : vector<2x1xf32>
    %138 = arith.mulf %9, %62 : vector<2x32xf32>
    %cst_33 = arith.constant dense<0.000000e+00> : vector<2xf32>
    %139 = vector.multi_reduction <add>, %138, %cst_33 [1] : vector<2x32xf32> to vector<2xf32>
    %140 = vector.shape_cast %139 : vector<2xf32> to vector<2x1xf32>
    %141 = arith.mulf %140, %132 : vector<2x1xf32>
    %142 = arith.mulf %141, %75 : vector<2x1xf32>
    %c1_i32_34 = arith.constant 1 : i32
    %143 = vector.broadcast %c1_i32_34 : i32 to vector<2x4xi32>
    %144 = arith.cmpi eq, %82, %143 : vector<2x4xi32>
    %cst_35 = arith.constant 0.000000e+00 : f32
    %145 = vector.shape_cast %137 : vector<2x1xf32> to vector<2x1xf32>
    %146 = vector.broadcast %145 : vector<2x1xf32> to vector<2x4xf32>
    %147 = vector.broadcast %cst_35 : f32 to vector<2x4xf32>
    %148 = arith.select %144, %146, %147 : vector<2x4xi1>, vector<2x4xf32>
    %149 = arith.addf %113, %148 : vector<2x4xf32>
    %c1_i32_36 = arith.constant 1 : i32
    %150 = vector.broadcast %c1_i32_36 : i32 to vector<2x4xi32>
    %151 = arith.cmpi eq, %82, %150 : vector<2x4xi32>
    %cst_37 = arith.constant 0.000000e+00 : f32
    %152 = vector.shape_cast %142 : vector<2x1xf32> to vector<2x1xf32>
    %153 = vector.broadcast %152 : vector<2x1xf32> to vector<2x4xf32>
    %154 = vector.broadcast %cst_37 : f32 to vector<2x4xf32>
    %155 = arith.select %151, %153, %154 : vector<2x4xi1>, vector<2x4xf32>
    %156 = arith.addf %120, %155 : vector<2x4xf32>
    %157 = arith.mulf %6, %6 : vector<2x32xf32>
    %cst_38 = arith.constant dense<0.000000e+00> : vector<2xf32>
    %158 = vector.multi_reduction <add>, %157, %cst_38 [1] : vector<2x32xf32> to vector<2xf32>
    %159 = vector.shape_cast %158 : vector<2xf32> to vector<2x1xf32>
    %cst_39 = arith.constant 1.000000e-16 : f32
    %160 = vector.broadcast %cst_39 : f32 to vector<2x1xf32>
    %161 = arith.maximumf %159, %160 : vector<2x1xf32>
    %162 = math.rsqrt %161 : vector<2x1xf32>
    %163 = arith.mulf %10, %10 : vector<2x32xf32>
    %cst_40 = arith.constant dense<0.000000e+00> : vector<2xf32>
    %164 = vector.multi_reduction <add>, %163, %cst_40 [1] : vector<2x32xf32> to vector<2xf32>
    %165 = vector.shape_cast %164 : vector<2xf32> to vector<2x1xf32>
    %cst_41 = arith.constant 1.000000e-16 : f32
    %166 = vector.broadcast %cst_41 : f32 to vector<2x1xf32>
    %167 = arith.maximumf %165, %166 : vector<2x1xf32>
    %168 = math.rsqrt %167 : vector<2x1xf32>
    %169 = arith.mulf %6, %69 : vector<2x32xf32>
    %cst_42 = arith.constant dense<0.000000e+00> : vector<2xf32>
    %170 = vector.multi_reduction <add>, %169, %cst_42 [1] : vector<2x32xf32> to vector<2xf32>
    %171 = vector.shape_cast %170 : vector<2xf32> to vector<2x1xf32>
    %172 = arith.mulf %171, %162 : vector<2x1xf32>
    %173 = arith.mulf %172, %81 : vector<2x1xf32>
    %174 = arith.mulf %10, %62 : vector<2x32xf32>
    %cst_43 = arith.constant dense<0.000000e+00> : vector<2xf32>
    %175 = vector.multi_reduction <add>, %174, %cst_43 [1] : vector<2x32xf32> to vector<2xf32>
    %176 = vector.shape_cast %175 : vector<2xf32> to vector<2x1xf32>
    %177 = arith.mulf %176, %168 : vector<2x1xf32>
    %178 = arith.mulf %177, %75 : vector<2x1xf32>
    %c2_i32_44 = arith.constant 2 : i32
    %179 = vector.broadcast %c2_i32_44 : i32 to vector<2x4xi32>
    %180 = arith.cmpi eq, %82, %179 : vector<2x4xi32>
    %cst_45 = arith.constant 0.000000e+00 : f32
    %181 = vector.shape_cast %173 : vector<2x1xf32> to vector<2x1xf32>
    %182 = vector.broadcast %181 : vector<2x1xf32> to vector<2x4xf32>
    %183 = vector.broadcast %cst_45 : f32 to vector<2x4xf32>
    %184 = arith.select %180, %182, %183 : vector<2x4xi1>, vector<2x4xf32>
    %185 = arith.addf %149, %184 : vector<2x4xf32>
    %c2_i32_46 = arith.constant 2 : i32
    %186 = vector.broadcast %c2_i32_46 : i32 to vector<2x4xi32>
    %187 = arith.cmpi eq, %82, %186 : vector<2x4xi32>
    %cst_47 = arith.constant 0.000000e+00 : f32
    %188 = vector.shape_cast %178 : vector<2x1xf32> to vector<2x1xf32>
    %189 = vector.broadcast %188 : vector<2x1xf32> to vector<2x4xf32>
    %190 = vector.broadcast %cst_47 : f32 to vector<2x4xf32>
    %191 = arith.select %187, %189, %190 : vector<2x4xi1>, vector<2x4xf32>
    %192 = arith.addf %156, %191 : vector<2x4xf32>
    %193 = arith.mulf %7, %7 : vector<2x32xf32>
    %cst_48 = arith.constant dense<0.000000e+00> : vector<2xf32>
    %194 = vector.multi_reduction <add>, %193, %cst_48 [1] : vector<2x32xf32> to vector<2xf32>
    %195 = vector.shape_cast %194 : vector<2xf32> to vector<2x1xf32>
    %cst_49 = arith.constant 1.000000e-16 : f32
    %196 = vector.broadcast %cst_49 : f32 to vector<2x1xf32>
    %197 = arith.maximumf %195, %196 : vector<2x1xf32>
    %198 = math.rsqrt %197 : vector<2x1xf32>
    %199 = arith.mulf %11, %11 : vector<2x32xf32>
    %cst_50 = arith.constant dense<0.000000e+00> : vector<2xf32>
    %200 = vector.multi_reduction <add>, %199, %cst_50 [1] : vector<2x32xf32> to vector<2xf32>
    %201 = vector.shape_cast %200 : vector<2xf32> to vector<2x1xf32>
    %cst_51 = arith.constant 1.000000e-16 : f32
    %202 = vector.broadcast %cst_51 : f32 to vector<2x1xf32>
    %203 = arith.maximumf %201, %202 : vector<2x1xf32>
    %204 = math.rsqrt %203 : vector<2x1xf32>
    %205 = arith.mulf %7, %69 : vector<2x32xf32>
    %cst_52 = arith.constant dense<0.000000e+00> : vector<2xf32>
    %206 = vector.multi_reduction <add>, %205, %cst_52 [1] : vector<2x32xf32> to vector<2xf32>
    %207 = vector.shape_cast %206 : vector<2xf32> to vector<2x1xf32>
    %208 = arith.mulf %207, %198 : vector<2x1xf32>
    %209 = arith.mulf %208, %81 : vector<2x1xf32>
    %210 = arith.mulf %11, %62 : vector<2x32xf32>
    %cst_53 = arith.constant dense<0.000000e+00> : vector<2xf32>
    %211 = vector.multi_reduction <add>, %210, %cst_53 [1] : vector<2x32xf32> to vector<2xf32>
    %212 = vector.shape_cast %211 : vector<2xf32> to vector<2x1xf32>
    %213 = arith.mulf %212, %204 : vector<2x1xf32>
    %214 = arith.mulf %213, %75 : vector<2x1xf32>
    %c3_i32_54 = arith.constant 3 : i32
    %215 = vector.broadcast %c3_i32_54 : i32 to vector<2x4xi32>
    %216 = arith.cmpi eq, %82, %215 : vector<2x4xi32>
    %cst_55 = arith.constant 0.000000e+00 : f32
    %217 = vector.shape_cast %209 : vector<2x1xf32> to vector<2x1xf32>
    %218 = vector.broadcast %217 : vector<2x1xf32> to vector<2x4xf32>
    %219 = vector.broadcast %cst_55 : f32 to vector<2x4xf32>
    %220 = arith.select %216, %218, %219 : vector<2x4xi1>, vector<2x4xf32>
    %221 = arith.addf %185, %220 : vector<2x4xf32>
    %c3_i32_56 = arith.constant 3 : i32
    %222 = vector.broadcast %c3_i32_56 : i32 to vector<2x4xi32>
    %223 = arith.cmpi eq, %82, %222 : vector<2x4xi32>
    %cst_57 = arith.constant 0.000000e+00 : f32
    %224 = vector.shape_cast %214 : vector<2x1xf32> to vector<2x1xf32>
    %225 = vector.broadcast %224 : vector<2x1xf32> to vector<2x4xf32>
    %226 = vector.broadcast %cst_57 : f32 to vector<2x4xf32>
    %227 = arith.select %223, %225, %226 : vector<2x4xi1>, vector<2x4xf32>
    %228 = arith.addf %192, %227 : vector<2x4xf32>
    %c0_58 = arith.constant 0 : index
    %c0_59 = arith.constant 0 : index
    %229 = vector.load %arg5[%c0_58, %c0_59] : memref<2x4xf32, #tpu.memory_space<vmem>>, vector<2x4xf32>
    tpu.vector_store %arg5[%c0_58, %c0_59], %221 {strides = array<i32>} : memref<2x4xf32, #tpu.memory_space<vmem>>, vector<2x4xf32>,
    %c0_60 = arith.constant 0 : index
    %c0_61 = arith.constant 0 : index
    %230 = vector.load %arg6[%c0_60, %c0_61] : memref<2x4xf32, #tpu.memory_space<vmem>>, vector<2x4xf32>
    tpu.vector_store %arg6[%c0_60, %c0_61], %228 {strides = array<i32>} : memref<2x4xf32, #tpu.memory_space<vmem>>, vector<2x4xf32>,
    return
  }
  func.func @transform_0(%arg0: i32) -> (i32, i32) {
    %c0_i32 = arith.constant 0 : i32
    %c0_i32_0 = arith.constant 0 : i32
    return %arg0, %c0_i32 : i32, i32
  }
  func.func @transform_1(%arg0: i32) -> (i32, i32) {
    %c0_i32 = arith.constant 0 : i32
    %c0_i32_0 = arith.constant 0 : i32
    return %arg0, %c0_i32 : i32, i32
  }
  func.func @transform_2(%arg0: i32) -> (i32, i32) {
    %c0_i32 = arith.constant 0 : i32
    %c0_i32_0 = arith.constant 0 : i32
    return %arg0, %c0_i32 : i32, i32
  }
  func.func @transform_3(%arg0: i32) -> (i32, i32) {
    %c0_i32 = arith.constant 0 : i32
    %c0_i32_0 = arith.constant 0 : i32
    return %arg0, %c0_i32 : i32, i32
  }
  func.func @transform_4(%arg0: i32) -> (i32, i32) {
    %c0_i32 = arith.constant 0 : i32
    %c0_i32_0 = arith.constant 0 : i32
    return %arg0, %c0_i32 : i32, i32
  }
  func.func @transform_5(%arg0: i32) -> (i32, i32) {
    %c0_i32 = arith.constant 0 : i32
    %c0_i32_0 = arith.constant 0 : i32
    return %arg0, %c0_i32 : i32, i32
  }
}

</mosaic_0001>

<bundles_post_ra>
// kernel: _forward_impl.1
= control target key start
LH: loop header
LB: loop body
LE: loop exit
PB: predicated region body
PF: predicated region fallthrough
CT: control target
= control target key end

     0   :  { %v382_v0 = vmov 0   ;;  %v383_v3 = vmov 0.0   ;;  %vm128_vm8 = vcmask 254976   ;;  %s385_s24 = smov 64   ;;  %vm316_vm13 = vcmask 25600   ;;  %s535_s0 = inlined_call_operand.vmem [shape: s32[2,1], index: 0, kind: input, shape index: {}]   ;;  %s536_s1 = inlined_call_operand.vmem [shape: s32[2,1], index: 1, kind: input, shape index: {}]   ;;  %s537_s2 = inlined_call_operand.vmem [shape: f32[2,128], index: 2, kind: input, shape index: {}]   ;;  %s538_s3 = inlined_call_operand.vmem [shape: f32[2,128], index: 3, kind: input, shape index: {}]   ;;  %s539_s5 = inlined_call_operand.vmem [shape: f32[2,4], index: 5, kind: output, shape index: {1}]   ;;  %s540_s4 = inlined_call_operand.vmem [shape: f32[2,4], index: 4, kind: output, shape index: {0}]  }
   0x1   :  { %356 = vset.pattern.permute.xlu1 %v382_v0  ;;  %340 = vset.pattern.permute.xlu0 %v382_v0  ;;  %v21_v1 = vld [vmem:[%s535_s0] sm:$0x3]  ;;  %s384_s0 = smov 96  }
   0x2   :  { %v22_v2 = vld [vmem:[%s536_s1] sm:$0x3]  ;;  %vm99_vm0 = vcmp.eq.s32.totalorder %v21_v1, 3  ;;  %vm23_vm2 = vcmp.eq.s32.totalorder %v21_v1, 0  ;;  %vm43_vm4 = vcmp.eq.s32.totalorder %v21_v1, 1  ;;  %vm71_vm6 = vcmp.eq.s32.totalorder %v21_v1, 2 }
   0x3   :  { %vm113_vm1 = vcmp.eq.s32.totalorder %v22_v2, 3  ;;  %vm33_vm3 = vcmp.eq.s32.totalorder %v22_v2, 0  ;;  %v333_v4 = vsel %vm99_vm0, 1.0, %v383_v3  ;;  %v327_v6 = vsel %vm23_vm2, 1.0, %v383_v3  ;;  %v426_v8 = vld [vmem:[%s537_s2] sm:$0x3] }
   0x4   :  { %v334_v5 = vsel %vm113_vm1, 1.0, %v383_v3  ;;  %v328_v7 = vsel %vm33_vm3, 1.0, %v383_v3  ;;  %vm57_vm5 = vcmp.eq.s32.totalorder %v22_v2, 1  ;;  %v329_v11 = vsel %vm43_vm4, 1.0, %v383_v3  ;;  %v434_v18 = vld [vmem:[%s538_s3] sm:$0x3] }
   0x5   :  { %v357_v9 = vpack.i.bf16 %v334_v5, %v333_v4  ;;  %v341_v10 = vpack.i.bf16 %v328_v7, %v327_v6  ;;  %v330_v12 = vsel %vm57_vm5, 1.0, %v383_v3  ;;  %vm85_vm7 = vcmp.eq.s32.totalorder %v22_v2, 2  ;;  %s386_s3 = smov 32  }
   0x6   :  { %v346_v13 = vpack.i.bf16 %v330_v12, %v329_v11  ;;  %v142_v14 = vmul.f32 %v426_v8, %v426_v8  ;;  %v331_v15 = vsel %vm71_vm6, 1.0, %v383_v3  ;;  %v332_v16 = vsel %vm85_vm7, 1.0, %v383_v3 }
   0x7   :  { %358 = vperm.xlu1 %356, %v357_v9   ;;  %342 = vperm.xlu0 %340, %v341_v10   ;;  %v351_v17 = vpack.i.bf16 %v332_v16, %v331_v15  ;;  %v148_v20 = vmul.f32 %v434_v18, %v434_v18 }
   0x8   :  { %v143_v19 = vsel %vm128_vm8, %v142_v14, 0.0 }
   0x9   :  { %v149_v21 = vsel %vm128_vm8, %v148_v20, 0.0 }
   0xb   :  { %347 = vperm.xlu0 %340, %v346_v13   ;;  %172 = vrot.lane.b32.xlu1 %v142_v14, %s384_s0 }
   0xf   :  { %352 = vperm.xlu0 %340, %v351_v17  }
  0x2e   :  { %144 = vadd.xlane.f32.xlu0 %v143_v19 }
  0x32   :  { %150 = vadd.xlane.f32.xlu0 %v149_v21 }
  0x48   :  { %181 = vrot.lane.b32.xlu0 %v148_v20, %s384_s0 }
  0x4c   :  { %222 = vrot.lane.b32.xlu0 %v142_v14, %s385_s24 }
  0x82   :  { %v359_v22 = vpop.permute.xlu1 %358  ;;  %v343_v25 = vpop.permute.xlu0 %342 }
  0x83   :  { %v360_v29 = vunpack.i.l.bf16 %v359_v22  ;;  %v361_v44 = vunpack.i.h.bf16 %v359_v22  ;;  %v345_v49 = vunpack.i.h.bf16 %v343_v25  ;;  %v344_v59 = vunpack.i.l.bf16 %v343_v25 }
  0x85   :  { %v107_v31 = vmul.f32 %v360_v29, %v426_v8  ;;  %v121_v45 = vmul.f32 %v361_v44, %v434_v18  ;;  %v41_v52 = vmul.f32 %v345_v49, %v434_v18  ;;  %v31_v61 = vmul.f32 %v344_v59, %v426_v8 }
  0x86   :  { %v173_v23 = vpop.permute.xlu1 %172  ;;  %v348_v26 = vpop.permute.xlu0 %347  ;;  %v140_v59 = vlaneseq }
  0x87   :  { %v175_v24 = vsel %vm128_vm8, %v173_v23, 0.0  ;;  %v349_v38 = vunpack.i.l.bf16 %v348_v26  ;;  %v350_v39 = vunpack.i.h.bf16 %v348_v26 }
  0x88   :  { %176 = vadd.xlane.f32.xlu0 %v175_v24 }
  0x89   :  { %v51_v40 = vmul.f32 %v349_v38, %v426_v8  ;;  %v65_v41 = vmul.f32 %v350_v39, %v434_v18 }
  0x8a   :  { %v353_v27 = vpop.permute.xlu0 %352 }
  0x8b   :  { %v355_v28 = vunpack.i.h.bf16 %v353_v27  ;;  %v354_v42 = vunpack.i.l.bf16 %v353_v27 }
  0x8d   :  { %v93_v30 = vmul.f32 %v355_v28, %v434_v18  ;;  %v79_v43 = vmul.f32 %v354_v42, %v426_v8 }
  0x9e   :  { %95 = vrot.lane.b32.xlu0 %v93_v30, %s385_s24 }
  0xa2   :  { %109 = vrot.lane.b32.xlu0 %v107_v31, %s386_s3 }
  0xb7   :  { %v447_v32 = vpop.xlane.xlu0 %144 }
  0xbb   :  { %v449_v33 = vpop.xlane.xlu0 %150 }
  0xbc   :  { %v152_v28 = vmax.f32 %v449_v33, 1e-16 }
  0xbe   :  { %362 = vrsqrt.f32 %v152_v28 }
  0xbf   :  { %v182_v34 = vpop.permute.xlu0 %181 }
  0xc0   :  { %v184_v35 = vsel %vm128_vm8, %v182_v34, 0.0 }
  0xc1   :  { %185 = vadd.xlane.f32.xlu1 %v184_v35 }
  0xc3   :  { %v223_v36 = vpop.permute.xlu0 %222 }
  0xc4   :  { %v225_v37 = vsel %vm128_vm8, %v223_v36, 0.0  ;;  %v146_v36 = vmax.f32 %v447_v32, 1e-16 }
  0xc5   :  { %226 = vadd.xlane.f32.xlu0 %v225_v37 }
  0xcb   :  { %v363_v31 = vpop.eup %362 }
  0xd2   :  { %53 = vrot.lane.b32.xlu1 %v51_v40, %s384_s0 }
  0xd6   :  { %67 = vrot.lane.b32.xlu1 %v65_v41, %s384_s0 }
  0xda   :  { %81 = vrot.lane.b32.xlu1 %v79_v43, %s385_s24 }
  0xdb   :  { %269 = vrot.lane.b32.xlu0 %v142_v14, %s386_s3 }
  0xde   :  { %230 = vrot.lane.b32.xlu1 %v148_v20, %s385_s24 }
  0xdf   :  { %277 = vrot.lane.b32.xlu0 %v148_v20, %s386_s3 }
  0xe2   :  { %123 = vrot.lane.b32.xlu1 %v121_v45, %s386_s3 }
 0x111   :  { %v466_v50 = vpop.xlane.xlu0 %176 }
 0x115   :  { %v96_v56 = vpop.permute.xlu0 %95 }
 0x119   :  { %v110_v0 = vpop.permute.xlu0 %109 }
 0x14a   :  { %v464_v46 = vpop.xlane.xlu1 %185 }
 0x14e   :  { %v54_v47 = vpop.permute.xlu1 %53  ;;  %v483_v11 = vpop.xlane.xlu0 %226 }
 0x14f   :  { %v56_v62 = vadd.f32 %v54_v47, %v31_v61  ;;  %v141_v61 = vand.u32 127, %v140_v59 }
 0x151   :  { %vm217_vm9 = vcmp.eq.s32.totalorder %v141_v61, 1  ;;  %vm166_vm10 = vcmp.eq.s32.totalorder %v141_v61, 0  ;;  %vm264_vm11 = vcmp.eq.s32.totalorder %v141_v61, 2  ;;  %vm311_vm12 = vcmp.eq.s32.totalorder %v141_v61, 3 }
 0x152   :  { %v68_v48 = vpop.permute.xlu1 %67  ;;  %v270_v12 = vpop.permute.xlu0 %269 }
 0x153   :  { %v70_v53 = vadd.f32 %v68_v48, %v41_v52 }
 0x155   :  { %v98_v57 = vadd.f32 %v96_v56, %v70_v53  ;;  %v272_v53 = vsel %vm128_vm8, %v270_v12, 0.0 }
 0x156   :  { %v82_v51 = vpop.permute.xlu1 %81  ;;  %v278_v13 = vpop.permute.xlu0 %277 }
 0x157   :  { %v84_v63 = vadd.f32 %v82_v51, %v56_v62  ;;  %v280_v48 = vsel %vm128_vm8, %v278_v13, 0.0 }
 0x159   :  { %v112_v1 = vadd.f32 %v110_v0, %v84_v63 }
 0x15a   :  { %v231_v54 = vpop.permute.xlu1 %230 }
 0x15b   :  { %v233_v55 = vsel %vm128_vm8, %v231_v54, 0.0  ;;  %v127_v2 = vmul.f32 %v112_v1, %v112_v1  ;;  %v160_v4 = vmul.f32 %v112_v1, %v434_v18 }
 0x15c   :  { %234 = vadd.xlane.f32.xlu1 %v233_v55 }
 0x15d   :  { %v129_v3 = vsel %vm128_vm8, %v127_v2, 0.0  ;;  %v161_v5 = vsel %vm128_vm8, %v160_v4, 0.0 }
 0x15e   :  { %v124_v58 = vpop.permute.xlu1 %123 }
 0x15f   :  { %v126_v60 = vadd.f32 %v124_v58, %v98_v57  ;;  %v178_v58 = vmax.f32 %v466_v50, 1e-16  ;;  %v228_v50 = vmax.f32 %v483_v11, 1e-16 }
 0x161   :  { %190 = vrot.lane.b32.xlu0 %v126_v60, %s386_s3  ;;  %v134_v6 = vmul.f32 %v126_v60, %v126_v60  ;;  %v154_v9 = vmul.f32 %v126_v60, %v426_v8 }
 0x163   :  { %v135_v7 = vsel %vm128_vm8, %v134_v6, 0.0  ;;  %v155_v10 = vsel %vm128_vm8, %v154_v9, 0.0 }
 0x165   :  { %285 = vrot.lane.b32.xlu0 %v126_v60, %s384_s0 }
 0x16d   :  { %204 = vrot.lane.b32.xlu1 %v112_v1, %s386_s3 }
 0x171   :  { %238 = vrot.lane.b32.xlu1 %v126_v60, %s385_s24 }
 0x175   :  { %251 = vrot.lane.b32.xlu1 %v112_v1, %s385_s24 }
 0x179   :  { %298 = vrot.lane.b32.xlu1 %v112_v1, %s384_s0  ;;  %v187_v1 = vmax.f32 %v464_v46, 1e-16 }
 0x184   :  { %130 = vadd.xlane.f32.xlu0 %v129_v3 }
 0x188   :  { %162 = vadd.xlane.f32.xlu0 %v161_v5 }
 0x19d   :  { %136 = vadd.xlane.f32.xlu1 %v135_v7 }
 0x1a1   :  { %156 = vadd.xlane.f32.xlu1 %v155_v10 }
 0x1d3   :  { %v191_v14 = vpop.permute.xlu0 %190 }
 0x1d4   :  { %v193_v15 = vmul.f32 %v191_v14, %v426_v8 }
 0x1d6   :  { %195 = vrot.lane.b32.xlu0 %v193_v15, %s384_s0 }
 0x1d7   :  { %v286_v24 = vpop.permute.xlu0 %285 }
 0x1d8   :  { %v288_v26 = vmul.f32 %v286_v24, %v426_v8 }
 0x1e5   :  { %v487_v16 = vpop.xlane.xlu1 %234 }
 0x1e6   :  { %v236_v5 = vmax.f32 %v487_v16, 1e-16 }
 0x1e9   :  { %v205_v17 = vpop.permute.xlu1 %204 }
 0x1ea   :  { %v207_v19 = vmul.f32 %v205_v17, %v434_v18 }
 0x1ec   :  { %209 = vrot.lane.b32.xlu0 %v207_v19, %s384_s0 }
 0x1ed   :  { %v239_v20 = vpop.permute.xlu1 %238 }
 0x1ee   :  { %v241_v21 = vmul.f32 %v239_v20, %v426_v8 }
 0x1f0   :  { %243 = vrot.lane.b32.xlu0 %v241_v21, %s385_s24 }
 0x1f1   :  { %v252_v22 = vpop.permute.xlu1 %251 }
 0x1f2   :  { %v254_v23 = vmul.f32 %v252_v22, %v434_v18 }
 0x1f4   :  { %256 = vrot.lane.b32.xlu1 %v254_v23, %s385_s24 }
 0x1f5   :  { %v299_v25 = vpop.permute.xlu1 %298 }
 0x1f6   :  { %v301_v27 = vmul.f32 %v299_v25, %v434_v18 }
 0x1f8   :  { %290 = vrot.lane.b32.xlu1 %v288_v26, %s386_s3  ;;  %303 = vrot.lane.b32.xlu0 %v301_v27, %s386_s3 }
 0x20d   :  { %v131_v29 = vpop.xlane.xlu0 %130 }
 0x20e   :  { %v132_v30 = vmax.f32 %v131_v29, 1e-16 }
 0x210   :  { %364 = vrsqrt.f32 %v132_v30 }
 0x211   :  { %v163_v34 = vpop.xlane.xlu0 %162  ;;  %366 = vrsqrt.f32 %v146_v36 }
 0x212   :  { %v164_v35 = vmul.f32 %v363_v31, %v163_v34 }
 0x21d   :  { %v501_v37 = vpop.eup %364 }
 0x21e   :  { %v165_v8 = vmul.f32 %v501_v37, %v164_v35  ;;  %v367_v39 = vpop.eup %366 }
 0x220   :  { %v169_v14 = vsel %vm166_vm10, %v165_v8, 0.0 }
 0x226   :  { %v137_v18 = vpop.xlane.xlu1 %136 }
 0x227   :  { %v138_v38 = vmax.f32 %v137_v18, 1e-16 }
 0x229   :  { %368 = vrsqrt.f32 %v138_v38 }
 0x22a   :  { %v157_v40 = vpop.xlane.xlu1 %156  ;;  %370 = vrsqrt.f32 %v178_v58 }
 0x22b   :  { %v158_v33 = vmul.f32 %v367_v39, %v157_v40  ;;  %372 = vrsqrt.f32 %v187_v1 }
 0x22c   :  { %374 = vrsqrt.f32 %v228_v50 }
 0x22d   :  { %376 = vrsqrt.f32 %v236_v5 }
 0x236   :  { %v504_v41 = vpop.eup %368 }
 0x237   :  { %v159_v42 = vmul.f32 %v504_v41, %v158_v33  ;;  %v371_v60 = vpop.eup %370 }
 0x238   :  { %v373_v6 = vpop.eup %372 }
 0x239   :  { %v167_v2 = vsel %vm166_vm10, %v159_v42, 0.0  ;;  %v375_v12 = vpop.eup %374 }
 0x23a   :  { %v377_v16 = vpop.eup %376 }
 0x248   :  { %v196_v43 = vpop.permute.xlu0 %195 }
 0x249   :  { %v198_v44 = vsel %vm128_vm8, %v196_v43, 0.0 }
 0x24a   :  { %199 = vadd.xlane.f32.xlu0 %v198_v44 }
 0x25e   :  { %v210_v32 = vpop.permute.xlu0 %209 }
 0x25f   :  { %v212_v45 = vsel %vm128_vm8, %v210_v32, 0.0 }
 0x260   :  { %213 = vadd.xlane.f32.xlu1 %v212_v45 }
 0x262   :  { %v244_v47 = vpop.permute.xlu0 %243 }
 0x263   :  { %v246_v49 = vsel %vm128_vm8, %v244_v47, 0.0 }
 0x264   :  { %281 = vadd.xlane.f32.xlu1 %v280_v48  ;;  %247 = vadd.xlane.f32.xlu0 %v246_v49 }
 0x266   :  { %v257_v51 = vpop.permute.xlu1 %256 }
 0x267   :  { %v259_v52 = vsel %vm128_vm8, %v257_v51, 0.0 }
 0x268   :  { %260 = vadd.xlane.f32.xlu1 %v259_v52  ;;  %273 = vadd.xlane.f32.xlu0 %v272_v53 }
 0x26a   :  { %v291_v54 = vpop.permute.xlu1 %290  ;;  %v304_v56 = vpop.permute.xlu0 %303 }
 0x26b   :  { %v293_v55 = vsel %vm128_vm8, %v291_v54, 0.0  ;;  %v306_v57 = vsel %vm128_vm8, %v304_v56, 0.0 }
 0x26c   :  { %294 = vadd.xlane.f32.xlu1 %v293_v55 }
 0x270   :  { %307 = vadd.xlane.f32.xlu1 %v306_v57 }
 0x2d3   :  { %v200_v62 = vpop.xlane.xlu0 %199 }
 0x2d4   :  { %v201_v63 = vmul.f32 %v371_v60, %v200_v62 }
 0x2d6   :  { %v202_v0 = vmul.f32 %v504_v41, %v201_v63 }
 0x2d8   :  { %v218_v3 = vsel %vm217_vm9, %v202_v0, 0.0 }
 0x2d9   :  { %v219_v4 = vadd.f32 %v218_v3, %v167_v2 }
 0x2e9   :  { %v214_v7 = vpop.xlane.xlu1 %213 }
 0x2ea   :  { %v215_v9 = vmul.f32 %v373_v6, %v214_v7 }
 0x2ec   :  { %v216_v10 = vmul.f32 %v501_v37, %v215_v9 }
 0x2ed   :  { %v282_v13 = vpop.xlane.xlu1 %281  ;;  %v248_v46 = vpop.xlane.xlu0 %247 }
 0x2ee   :  { %v220_v15 = vsel %vm217_vm9, %v216_v10, 0.0  ;;  %v283_v17 = vmax.f32 %v282_v13, 1e-16  ;;  %v249_v19 = vmul.f32 %v375_v12, %v248_v46 }
 0x2ef   :  { %v221_v20 = vadd.f32 %v220_v15, %v169_v14 }
 0x2f0   :  { %378 = vrsqrt.f32 %v283_v17  ;;  %v250_v11 = vmul.f32 %v504_v41, %v249_v19 }
 0x2f1   :  { %v261_v21 = vpop.xlane.xlu1 %260  ;;  %v274_v22 = vpop.xlane.xlu0 %273 }
 0x2f2   :  { %v265_v23 = vsel %vm264_vm11, %v250_v11, 0.0  ;;  %v262_v24 = vmul.f32 %v377_v16, %v261_v21  ;;  %v275_v25 = vmax.f32 %v274_v22, 1e-16 }
 0x2f3   :  { %v266_v26 = vadd.f32 %v265_v23, %v219_v4 }
 0x2f4   :  { %v263_v27 = vmul.f32 %v501_v37, %v262_v24  ;;  %380 = vrsqrt.f32 %v275_v25 }
 0x2f5   :  { %v295_v30 = vpop.xlane.xlu1 %294 }
 0x2f6   :  { %v267_v28 = vsel %vm264_vm11, %v263_v27, 0.0 }
 0x2f7   :  { %v268_v29 = vadd.f32 %v267_v28, %v221_v20 }
 0x2f9   :  { %v308_v34 = vpop.xlane.xlu1 %307 }
 0x2fd   :  { %v379_v31 = vpop.eup %378 }
 0x2fe   :  { %v309_v35 = vmul.f32 %v379_v31, %v308_v34 }
 0x300   :  { %v310_v36 = vmul.f32 %v501_v37, %v309_v35 }
 0x301   :  { %v381_v8 = vpop.eup %380 }
 0x302   :  { %v296_v18 = vmul.f32 %v381_v8, %v295_v30  ;;  %v314_v38 = vsel %vm311_vm12, %v310_v36, 0.0 }
 0x303   :  { %v315_v39 = vadd.f32 %v314_v38, %v268_v29 }
 0x304   :  { %v297_v40 = vmul.f32 %v504_v41, %v296_v18 }
 0x305   :  { %318 = vst.msk [vmem:[%s539_s5] sm:$0x3] %vm316_vm13, %v315_v39 }
 0x306   :  { %v312_v33 = vsel %vm311_vm12, %v297_v40, 0.0 }
 0x307   :  { %v313_v42 = vadd.f32 %v312_v33, %v266_v26 }
 0x309   :  { %317 = vst.msk [vmem:[%s540_s4] sm:$0x3] %vm316_vm13, %v313_v42 }

</bundles_post_ra>
